<compile_context>
chip_gen: v7x
topology: tpu7x:2x2x1
jax: 0.10.0
libtpu: 0.0.40
codegen_flags: <defaults>
</compile_context>

<pallas_src>
import jax
import jax.numpy as jnp
from jax.experimental import pallas as pl
from jax.experimental.pallas import tpu as pltpu


# ---------------------------------------------------------------------------
# Kernels
# ---------------------------------------------------------------------------

def _ffn_kernel_resident(x_ref, w1_ref, b1_ref, w2_ref, b2_ref, o_ref):
    """Weights fully resident in VMEM; grid = (num_row_tiles,)."""
    # x_ref: (TM, D)   w1_ref: (D, H)   b1_ref: (1, H)
    # w2_ref: (H, D)   b2_ref: (1, D)   o_ref: (TM, D)
    h = jnp.dot(x_ref[...], w1_ref[...], preferred_element_type=jnp.float32)
    h = jnp.maximum(h + b1_ref[...], 0.0)
    # dropout: identity (eval mode)
    out = jnp.dot(h.astype(w2_ref.dtype), w2_ref[...],
                  preferred_element_type=jnp.float32)
    o_ref[...] = (out + b2_ref[...]).astype(o_ref.dtype)


def _ffn_kernel_htiled(x_ref, w1_ref, b1_ref, w2_ref, b2_ref, o_ref, *scratch):
    """Hidden dim streamed along grid axis 1 with f32 accumulation.

    If `scratch` is empty the output tile itself (f32, resident across the j
    axis since its index_map ignores j) is used as the accumulator, saving
    TM*D*4 bytes of VMEM.  Otherwise scratch[0] is the f32 accumulator.
    """
    acc_ref = scratch[0] if scratch else o_ref
    j = pl.program_id(1)

    @pl.when(j == 0)
    def _init():
        acc_ref[...] = jnp.zeros(acc_ref.shape, acc_ref.dtype)

    # GEMM1 chunk: (TM, D) @ (D, TH) -> (TM, TH), bias + ReLU fused.
    h = jnp.dot(x_ref[...], w1_ref[...], preferred_element_type=jnp.float32)
    h = jnp.maximum(h + b1_ref[...], 0.0)
    # dropout: identity (eval mode)

    # GEMM2 chunk: (TM, TH) @ (TH, D), accumulated in f32.
    acc_ref[...] += jnp.dot(h.astype(w2_ref.dtype), w2_ref[...],
                            preferred_element_type=jnp.float32)

    @pl.when(j == pl.num_programs(1) - 1)
    def _finalize():
        o_ref[...] = (acc_ref[...] + b2_ref[...]).astype(o_ref.dtype)


# ---------------------------------------------------------------------------
# Tiling helpers
# ---------------------------------------------------------------------------

def _round_up(x, m):
    return ((x + m - 1) // m) * m


def _vmem_budget_bytes():
    """~7/8 of per-core VMEM (128 MiB on v5e/v6e, 64 MiB on v7x)."""
    cap = 64 << 20                       # conservative fallback (v7x-sized)
    try:
        cap = int(pltpu.get_tpu_info().vmem_capacity_bytes)
    except Exception:
        pass
    return (cap * 7) // 8


def _choose_row_tile(rows, target, sub, fits):
    """Pick (tile_rows, rows_padded): prefer no padding, then VMEM fit, then size."""
    # 1) single full-extent tile (no padding; exempt from the (8,128) rule).
    if rows <= target and fits(rows):
        return rows, rows
    # Padded candidate: shrink from target until the working set fits.
    tr_pad = min(max((target // sub) * sub, sub), _round_up(rows, sub))
    while tr_pad > sub and not fits(tr_pad):
        tr_pad = max(sub, ((tr_pad // 2) // sub) * sub)
    # 2) largest sub-aligned exact divisor of rows that fits; prefer it over the
    #    padded candidate unless it is less than half its size.
    t = min((target // sub) * sub, (rows // sub) * sub)
    best_div = None
    while t >= sub:
        if rows % t == 0 and fits(t):
            best_div = t
            break
        t -= sub
    if best_div is not None and 2 * best_div >= tr_pad:
        return best_div, rows
    return tr_pad, _round_up(rows, tr_pad)


def _hidden_tile_candidates(h_dim, preferred=2048):
    """Divisors of h_dim that are multiples of 128, best first.

    Larger slices cut the f32 accumulator read-modify-write traffic; slices
    that are multiples of 256 fill the v6e/v7x 2x256^2 MXU without a
    half-occupied pass, so non-256-multiples are discounted.
    """
    cands = [t for t in range(128, min(h_dim, preferred) + 1, 128)
             if h_dim % t == 0]
    return sorted(cands, key=lambda t: (t if t % 256 == 0 else (3 * t) // 4),
                  reverse=True)


# ---------------------------------------------------------------------------
# Wrapper
# ---------------------------------------------------------------------------

def positionwise_feed_forward(x, w1, b1, w2, b2, *,
                              tile_rows=None, tile_hidden=None,
                              compute_dtype=None):
    """FFN forward: relu(x @ w1 + b1) @ w2 + b2  (dropout = identity, eval mode).

    x: [batch, seq, D]; w1: [D, H]; b1: [H]; w2: [H, D]; b2: [D].
    compute_dtype: optional cast (e.g. jnp.bfloat16) for full MXU rate and
    halved DMA traffic; accumulation stays f32 and the result is cast back to
    x.dtype.
    """
    orig_dtype = x.dtype
    batch, seq, d = x.shape
    h_dim = w1.shape[1]
    rows = batch * seq
    x2 = x.reshape(rows, d)

    if compute_dtype is not None:
        cd = jnp.dtype(compute_dtype)
        x2 = x2.astype(cd)
        w1 = w1.astype(cd)
        b1 = b1.astype(cd)
        w2 = w2.astype(cd)
        b2 = b2.astype(cd)

    out_dtype = x2.dtype
    x_isz = jnp.dtype(x2.dtype).itemsize
    w_isz = jnp.dtype(w1.dtype).itemsize
    sub = 16 if x_isz == 2 else 8            # sublane packing of the row dim
    out_is_f32 = jnp.dtype(out_dtype) == jnp.dtype(jnp.float32)

    budget = _vmem_budget_bytes()
    avail = max(budget - (8 << 20), 16 << 20)    # headroom for compiler scratch

    # ---- VMEM-need estimators (double-buffered blocks + live intermediates) --
    def need_resident(tr):
        return (2 * tr * d * 2 * x_isz                       # x + out tiles
                + 2 * (2 * d * h_dim + h_dim + d) * w_isz    # W1, W2, b1, b2
                + tr * h_dim * (4 + w_isz))                   # f32 h (+ cast copy)

    def need_htiled(tr, th):
        return (2 * tr * d * 2 * x_isz
                + 2 * (2 * d * th + th + d) * w_isz
                + tr * th * (4 + w_isz)
                + (0 if out_is_f32 else tr * d * 4))          # separate f32 acc

    # ---- hidden-dim tiling decision -------------------------------------------
    if tile_hidden is not None:
        tile_hidden = int(tile_hidden)
        assert h_dim % tile_hidden == 0
        assert tile_hidden == h_dim or tile_hidden % 128 == 0
    else:
        probe_tr = min(_round_up(rows, sub), 128)
        if need_resident(probe_tr) <= avail:
            tile_hidden = h_dim                     # weights fully resident
        else:
            cands = _hidden_tile_candidates(h_dim)
            probe_tr = min(_round_up(rows, sub), 256)
            chosen = None
            for th in cands:
                if need_htiled(probe_tr, th) <= avail:
                    chosen = th
                    break
            if chosen is None and cands:
                chosen = min(cands)                 # best effort: smallest slice
            tile_hidden = chosen if chosen is not None else h_dim
    resident = (tile_hidden == h_dim)

    # ---- row tiling ------------------------------------------------------------
    target_rows = 1024 if x_isz <= 2 else 512
    if resident:
        fit = lambda tr: need_resident(tr) <= avail
    else:
        fit = lambda tr: need_htiled(tr, tile_hidden) <= avail

    if tile_rows is not None:
        tile_rows = max(sub, _round_up(int(tile_rows), sub))
        tile_rows = min(tile_rows, _round_up(rows, sub))
        rows_p = _round_up(rows, tile_rows)
    else:
        tile_rows, rows_p = _choose_row_tile(rows, target_rows, sub, fit)
        # A single oversized row tile leaves one of v7x's two TensorCores idle:
        # split it so the "parallel" axis has at least two steps.
        if (rows_p // tile_rows == 1 and tile_rows >= 512
                and tile_rows % (2 * sub) == 0):
            tile_rows //= 2

    if rows_p != rows:
        # TODO(synk): handle the ragged tail with a smaller final row tile
        # instead of padding (saves one extra HBM pass over x / out).
        x2 = jnp.pad(x2, ((0, rows_p - rows), (0, 0)))

    b1_2 = b1.reshape(1, h_dim)
    b2_2 = b2.reshape(1, d)
    num_row_tiles = rows_p // tile_rows
    vmem_limit = int(max(budget, 32 << 20))

    weight_bytes = (2 * d * h_dim + h_dim + d) * w_isz
    act_bytes = 2 * rows_p * d * x_isz
    cost = pl.CostEstimate(
        flops=int(4 * rows_p * d * h_dim),
        transcendentals=0,
        bytes_accessed=int(act_bytes
                           + weight_bytes * (1 if resident else num_row_tiles)),
    )

    if resident:
        grid = (num_row_tiles,)
        in_specs = [
            pl.BlockSpec((tile_rows, d), lambda i: (i, 0)),   # x row tile
            pl.BlockSpec((d, h_dim), lambda i: (0, 0)),       # W1 (resident)
            pl.BlockSpec((1, h_dim), lambda i: (0, 0)),       # b1 (resident)
            pl.BlockSpec((h_dim, d), lambda i: (0, 0)),       # W2 (resident)
            pl.BlockSpec((1, d), lambda i: (0, 0)),           # b2 (resident)
        ]
        out_specs = pl.BlockSpec((tile_rows, d), lambda i: (i, 0))
        scratch_shapes = []
        kernel = _ffn_kernel_resident
        dim_sem = ("parallel",)
    else:
        grid = (num_row_tiles, h_dim // tile_hidden)
        in_specs = [
            pl.BlockSpec((tile_rows, d), lambda i, j: (i, 0)),     # x row tile
            pl.BlockSpec((d, tile_hidden), lambda i, j: (0, j)),   # W1 col slice
            pl.BlockSpec((1, tile_hidden), lambda i, j: (0, j)),   # b1 slice
            pl.BlockSpec((tile_hidden, d), lambda i, j: (j, 0)),   # W2 row slice
            pl.BlockSpec((1, d), lambda i, j: (0, 0)),             # b2 (resident)
        ]
        out_specs = pl.BlockSpec((tile_rows, d), lambda i, j: (i, 0))
        # f32 outputs accumulate in-place into the resident output tile;
        # low-precision outputs get a separate f32 scratch accumulator.
        scratch_shapes = ([] if out_is_f32
                          else [pltpu.VMEM((tile_rows, d), jnp.float32)])
        kernel = _ffn_kernel_htiled
        dim_sem = ("parallel", "arbitrary")

    out = pl.pallas_call(
        kernel,
        out_shape=jax.ShapeDtypeStruct((rows_p, d), out_dtype),
        grid_spec=pltpu.PrefetchScalarGridSpec(
            num_scalar_prefetch=0,
            grid=grid,
            in_specs=in_specs,
            out_specs=out_specs,
            scratch_shapes=scratch_shapes,
        ),
        compiler_params=pltpu.CompilerParams(
            dimension_semantics=dim_sem,
            vmem_limit_bytes=vmem_limit),
        cost_estimate=cost,
    )(x2, w1, b1_2, w2, b2_2)

    if rows_p != rows:
        out = out[:rows]
    out = out.reshape(batch, seq, d)
    if out.dtype != orig_dtype:
        out = out.astype(orig_dtype)
    return out


def init_params(key, model_dim, d_hidden, dtype=jnp.float32):
    """Parameter shapes matching the PyTorch module; weights stored [in, out]
    so the kernel multiplies without a transpose (== x @ W.T numerically).
    Kaiming-style uniform init; not bit-matched to torch defaults (test-only)."""
    k1, k2, k3, k4 = jax.random.split(key, 4)
    bound1 = (6.0 / model_dim) ** 0.5
    bound2 = (6.0 / model_dim) ** 0.5
    w1 = jax.random.uniform(k1, (model_dim, d_hidden), dtype, -bound1, bound1)
    w2 = jax.random.uniform(k2, (d_hidden, model_dim), dtype, -bound2, bound2)
    b1 = jax.random.uniform(k3, (d_hidden,), dtype,
                            -1.0 / model_dim ** 0.5, 1.0 / model_dim ** 0.5)
    b2 = jax.random.uniform(k4, (model_dim,), dtype,
                            -1.0 / d_hidden ** 0.5, 1.0 / d_hidden ** 0.5)
    return w1, b1, w2, b2


if __name__ == "__main__":
    hi = jax.lax.Precision.HIGHEST

    # --- 1. small shapes: resident-weights path, single full-extent row tile ---
    batch, seq, model_dim, d_hidden = 2, 8, 32, 64
    kx, kp = jax.random.split(jax.random.PRNGKey(0))
    x = jax.random.normal(kx, (batch, seq, model_dim), jnp.float32)
    w1, b1, w2, b2 = init_params(kp, model_dim, d_hidden)

    out = jax.block_until_ready(positionwise_feed_forward(x, w1, b1, w2, b2))
    ref = jnp.maximum(x @ w1 + b1, 0.0) @ w2 + b2
    assert out.shape == (batch, seq, model_dim)
    assert jnp.allclose(out, ref, atol=1e-5, rtol=1e-5)

    # --- 2. resident path, rows=200 (no padding, single row tile) --------------
    batch2, seq2, d2, h2 = 2, 100, 128, 768
    kx2, kp2 = jax.random.split(jax.random.PRNGKey(1))
    x_b = jax.random.normal(kx2, (batch2, seq2, d2), jnp.float32)
    w1b, b1b, w2b, b2b = init_params(kp2, d2, h2)

    ref_b = jnp.dot(jnp.maximum(jnp.dot(x_b, w1b, precision=hi) + b1b, 0.0),
                    w2b, precision=hi) + b2b

    out_b = jax.block_until_ready(
        positionwise_feed_forward(x_b, w1b, b1b, w2b, b2b))
    assert out_b.shape == (batch2, seq2, d2)
    assert jnp.allclose(out_b, ref_b, atol=2e-3, rtol=2e-3)

    # --- 3. forced H-tiled path (f32: in-place accumulation into the output),
    #        with row padding (200 -> 256) and multiple row tiles ---------------
    out_t = jax.block_until_ready(
        positionwise_feed_forward(x_b, w1b, b1b, w2b, b2b,
                                  tile_rows=64, tile_hidden=256))
    assert out_t.shape == (batch2, seq2, d2)
    assert jnp.allclose(out_t, ref_b, atol=2e-3, rtol=2e-3)

    # --- 4. forced H-tiled path with bf16 inputs (separate f32 scratch acc) ----
    xb16 = x_b.astype(jnp.bfloat16)
    w1b16, b1b16 = w1b.astype(jnp.bfloat16), b1b.astype(jnp.bfloat16)
    w2b16, b2b16 = w2b.astype(jnp.bfloat16), b2b.astype(jnp.bfloat16)
    out_bf = jax.block_until_ready(
        positionwise_feed_forward(xb16, w1b16, b1b16, w2b16, b2b16,
                                  tile_rows=64, tile_hidden=256))
    h_ref = jnp.maximum(
        jnp.dot(xb16.astype(jnp.float32), w1b16.astype(jnp.float32),
                precision=hi) + b1b16.astype(jnp.float32), 0.0
    ).astype(jnp.bfloat16)
    ref_bf = jnp.dot(h_ref.astype(jnp.float32), w2b16.astype(jnp.float32),
                     precision=hi) + b2b16.astype(jnp.float32)
    assert out_bf.dtype == jnp.bfloat16
    assert jnp.allclose(out_bf.astype(jnp.float32), ref_bf, atol=5e-2, rtol=5e-2)

    print("KERNEL_OK")
</pallas_src>

<mosaic_0001>
module attributes {stable_mosaic.version = 11 : i64} {
  func.func @_ffn_kernel_resident(%arg0: i32, %arg1: memref<16x32xf32, #tpu.memory_space<vmem>>, %arg2: memref<32x64xf32, #tpu.memory_space<vmem>>, %arg3: memref<1x64xf32, #tpu.memory_space<vmem>>, %arg4: memref<64x32xf32, #tpu.memory_space<vmem>>, %arg5: memref<1x32xf32, #tpu.memory_space<vmem>>, %arg6: memref<16x32xf32, #tpu.memory_space<vmem>>) attributes {dimension_semantics = [#tpu.dimension_semantics<parallel>], iteration_bounds = array<i64: 1>, scalar_prefetch = 0 : i64, scratch_operands = 0 : i64, tpu.core_type = #tpu.core_type<tc>, window_params = [{transform_indices = @transform_0, window_bounds = array<i64: 16, 32>}, {pipeline_mode = #tpu.pipeline_mode<synchronous>, transform_indices = @transform_1, window_bounds = array<i64: 32, 64>}, {pipeline_mode = #tpu.pipeline_mode<synchronous>, transform_indices = @transform_2, window_bounds = array<i64: 1, 64>}, {pipeline_mode = #tpu.pipeline_mode<synchronous>, transform_indices = @transform_3, window_bounds = array<i64: 64, 32>}, {pipeline_mode = #tpu.pipeline_mode<synchronous>, transform_indices = @transform_4, window_bounds = array<i64: 1, 32>}, {transform_indices = @transform_5, window_bounds = array<i64: 16, 32>}]} {
    %c0 = arith.constant 0 : index
    %c0_0 = arith.constant 0 : index
    %0 = vector.load %arg1[%c0, %c0_0] : memref<16x32xf32, #tpu.memory_space<vmem>>, vector<16x32xf32>
    %c0_1 = arith.constant 0 : index
    %c0_2 = arith.constant 0 : index
    %1 = vector.load %arg2[%c0_1, %c0_2] : memref<32x64xf32, #tpu.memory_space<vmem>>, vector<32x64xf32>
    %cst = arith.constant dense<0.000000e+00> : vector<16x64xf32>
    %2 = tpu.matmul %0, %1, %cst {dimension_numbers = #tpu.dot_dimension_numbers<[1], [0], [0], [1], [0, 0, 1, 1], [], []>} : vector<16x32xf32>, vector<32x64xf32>, vector<16x64xf32> -> vector<16x64xf32>
    %c0_3 = arith.constant 0 : index
    %c0_4 = arith.constant 0 : index
    %3 = vector.load %arg3[%c0_3, %c0_4] : memref<1x64xf32, #tpu.memory_space<vmem>>, vector<1x64xf32>
    %4 = vector.broadcast %3 : vector<1x64xf32> to vector<16x64xf32>
    %5 = arith.addf %2, %4 : vector<16x64xf32>
    %cst_5 = arith.constant 0.000000e+00 : f32
    %6 = vector.broadcast %cst_5 : f32 to vector<16x64xf32>
    %7 = arith.maximumf %5, %6 : vector<16x64xf32>
    %c0_6 = arith.constant 0 : index
    %c0_7 = arith.constant 0 : index
    %8 = vector.load %arg4[%c0_6, %c0_7] : memref<64x32xf32, #tpu.memory_space<vmem>>, vector<64x32xf32>
    %cst_8 = arith.constant dense<0.000000e+00> : vector<16x32xf32>
    %9 = tpu.matmul %7, %8, %cst_8 {dimension_numbers = #tpu.dot_dimension_numbers<[1], [0], [0], [1], [0, 0, 1, 1], [], []>} : vector<16x64xf32>, vector<64x32xf32>, vector<16x32xf32> -> vector<16x32xf32>
    %c0_9 = arith.constant 0 : index
    %c0_10 = arith.constant 0 : index
    %10 = vector.load %arg5[%c0_9, %c0_10] : memref<1x32xf32, #tpu.memory_space<vmem>>, vector<1x32xf32>
    %11 = vector.broadcast %10 : vector<1x32xf32> to vector<16x32xf32>
    %12 = arith.addf %9, %11 : vector<16x32xf32>
    %c0_11 = arith.constant 0 : index
    %c0_12 = arith.constant 0 : index
    %13 = vector.load %arg6[%c0_11, %c0_12] : memref<16x32xf32, #tpu.memory_space<vmem>>, vector<16x32xf32>
    tpu.vector_store %arg6[%c0_11, %c0_12], %12 {strides = array<i32>} : memref<16x32xf32, #tpu.memory_space<vmem>>, vector<16x32xf32>,
    return
  }
  func.func @transform_0(%arg0: i32) -> (i32, i32) {
    %c0_i32 = arith.constant 0 : i32
    %c0_i32_0 = arith.constant 0 : i32
    return %arg0, %c0_i32 : i32, i32
  }
  func.func @transform_1(%arg0: i32) -> (i32, i32) {
    %c0_i32 = arith.constant 0 : i32
    %c0_i32_0 = arith.constant 0 : i32
    %c0_i32_1 = arith.constant 0 : i32
    return %c0_i32, %c0_i32_0 : i32, i32
  }
  func.func @transform_2(%arg0: i32) -> (i32, i32) {
    %c0_i32 = arith.constant 0 : i32
    %c0_i32_0 = arith.constant 0 : i32
    %c0_i32_1 = arith.constant 0 : i32
    return %c0_i32, %c0_i32_0 : i32, i32
  }
  func.func @transform_3(%arg0: i32) -> (i32, i32) {
    %c0_i32 = arith.constant 0 : i32
    %c0_i32_0 = arith.constant 0 : i32
    %c0_i32_1 = arith.constant 0 : i32
    return %c0_i32, %c0_i32_0 : i32, i32
  }
  func.func @transform_4(%arg0: i32) -> (i32, i32) {
    %c0_i32 = arith.constant 0 : i32
    %c0_i32_0 = arith.constant 0 : i32
    %c0_i32_1 = arith.constant 0 : i32
    return %c0_i32, %c0_i32_0 : i32, i32
  }
  func.func @transform_5(%arg0: i32) -> (i32, i32) {
    %c0_i32 = arith.constant 0 : i32
    %c0_i32_0 = arith.constant 0 : i32
    return %arg0, %c0_i32 : i32, i32
  }
}

</mosaic_0001>

<bundles_post_ra>
// kernel: tpu_custom_call.1
= control target key start
LH: loop header
LB: loop body
LE: loop exit
PB: predicated region body
PF: predicated region fallthrough
CT: control target
= control target key end

     0   :  { %vm34_vm0 = vcmask 261120   ;;  %s433_s0 = inlined_call_operand.vmem [shape: f32[16,32], index: 0, kind: input, shape index: {}]   ;;  %s434_s1 = inlined_call_operand.vmem [shape: f32[32,64], index: 1, kind: input, shape index: {}]   ;;  %s435_s2 = inlined_call_operand.vmem [shape: f32[1,64], index: 2, kind: input, shape index: {}]   ;;  %s436_s3 = inlined_call_operand.vmem [shape: f32[64,32], index: 3, kind: input, shape index: {}]   ;;  %s437_s4 = inlined_call_operand.vmem [shape: f32[1,32], index: 4, kind: input, shape index: {}]   ;;  %s438_s5 = inlined_call_operand.hbm [shape: f32[16,32], index: 5, kind: output, shape index: {}]  }
   0x1   :  { %v23_v0 = vld [vmem:[%s434_s1] sm:$0xff]  ;;  %v24_v1 = vld [vmem:[%s434_s1 + $0x8] sm:$0xff]  ;;  %v25_v2 = vld [vmem:[%s434_s1 + $0x10] sm:$0xff] }
   0x2   :  { %v285_v3 = vpack.c.bf16 %v24_v1, %v23_v0  ;;  %v26_v4 = vld [vmem:[%s434_s1 + $0x18] sm:$0xff]  ;;  %v21_v5 = vld [vmem:[%s433_s0] sm:$0xff]  ;;  %v119_v8 = vld [vmem:[%s436_s3 + $0x8] sm:$0xff] }
   0x3   :  { %v289_v6 = vpack.c.bf16 %v26_v4, %v25_v2  ;;  %263 = vmatprep.mubr.msk.f32.mxu0 %vm34_vm0, %v21_v5  ;;  %v118_v7 = vld [vmem:[%s436_s3] sm:$0xff]  ;;  %v120_v9 = vld [vmem:[%s436_s3 + $0x10] sm:$0xff]  ;;  %v121_v11 = vld [vmem:[%s436_s3 + $0x18] sm:$0xff] }
   0x4   :  { %286 = vmatprep.subr.bf16.mxu0 %v285_v3  ;;  %v293_v10 = vpack.c.bf16 %v119_v8, %v118_v7  ;;  %v297_v12 = vpack.c.bf16 %v121_v11, %v120_v9  ;;  %v122_v13 = vld [vmem:[%s436_s3 + $0x20] sm:$0xff]  ;;  %v123_v14 = vld [vmem:[%s436_s3 + $0x28] sm:$0xff] }
   0x5   :  { %288 = vmatpush3.bf16.msra.mxu0 %v285_v3 }
   0x6   :  { %10 = vsyncpa [#allocation3], 0  ;;  %290 = vmatprep.subr.bf16.mxu0 %v289_v6  ;;  %294 = vmatprep.subr.bf16.mxu1 %v293_v10  ;;  %v301_v15 = vpack.c.bf16 %v123_v14, %v122_v13  ;;  %v22_v16 = vld [vmem:[%s433_s0 + $0x8] sm:$0xff]  ;;  %v124_v17 = vld [vmem:[%s436_s3 + $0x30] sm:$0xff]  ;;  %vm133_vm1 = vcmask 523264  }
   0x7   :  { %296 = vmatpush3.bf16.msra.mxu1 %v293_v10  ;;  %v125_v18 = vld [vmem:[%s436_s3 + $0x38] sm:$0xff]  ;;  %v233_v20 = vld [vmem:[%s435_s2] ss:$0 sm:$0xff]  ;;  %s336_s3 = smov [#allocation2]  }
   0x8   :  { %298 = vmatprep.subr.bf16.mxu1 %v297_v12  ;;  %v305_v19 = vpack.c.bf16 %v125_v18, %v124_v17  ;;  %v236_v27 = vld [vmem:[%s437_s4] ss:$0 sm:$0xff]  ;;  %s222_s23 = sshll.u32 %s336_s3, 4  ;;  %s223_s23 = int_to_ptr.vmem [resolvable:$true] %s222_s23 }
   0x9   :  { %292 = vmatpush3.bf16.msra.mxu0 %v289_v6  ;;  %s312_s2 = scalar_lea.vmem %s223_s23, 256  ;;  %p317_p1 = scmp.lt.s32.totalorder %s223_s23, %s223_s23 }
   0xa   :  { %p313_p0 = scmp.ne.s32.totalorder %s223_s23, %s312_s2  ;;  %p318_p2 = scmp.lt.s32.totalorder %s312_s2, %s312_s2 }
   0xb   :  { %300 = vmatpush3.bf16.msra.mxu1 %v297_v12 }
   0xc   :  { %264 = vmatmul.mubr.msk.f32.vlgmr.msra.gmra.mrb[0].mxu0 %vm34_vm0, %v22_v16  ;;  %302 = vmatprep.subr.bf16.mxu1 %v301_v15  ;;  %p319_p3 = por %p318_p2, %p317_p1 }
   0xe   :  { %p320_p4 = pnand %p319_p3, %p313_p0 }
   0xf   :  { %304 = vmatpush3.bf16.msra.mxu1 %v301_v15 }
  0x10   :  { %306 = vmatprep.subr.bf16.mxu1 %v305_v19 }
  0x13   :  { %308 = vmatpush3.bf16.msra.mxu1 %v305_v19 }
  0xdf   :  { %v265_v21 = vpop.f32.mrb[0].mxu0 }
  0xe0   :  { %v113_v22 = vadd.f32 %v265_v21, %v233_v20  ;;  %v107_v23 = vpop.f32.mrb[1].mxu0 }
  0xe1   :  { %v108_v24 = vadd.f32 %v233_v20, %v107_v23 }
  0xe2   :  { %v117_v26 = vmax.f32 %v113_v22, 0.0 }
  0xe3   :  { %v116_v25 = vmax.f32 %v108_v24, 0.0 }
  0xe5   :  { %282 = vmatprep.mubr.msk.f32.mxu1 %vm133_vm1, %v116_v25 }
  0xe6   :  { %283 = vmatmul.mubr.msk.f32.vlgmr.msra.gmra.mrb[0].mxu1 %vm133_vm1, %v117_v26 }
 0x1b9   :  { %v284_v28 = vpop.f32.mrb[0].mxu1 }
 0x1ba   :  { %v212_v29 = vadd.f32 %v284_v28, %v236_v27  ;;  %v206_v30 = vpop.f32.mrb[1].mxu1 }
 0x1bb   :  { %v207_v31 = vadd.f32 %v236_v27, %v206_v30 }
 0x1bc   :  { %216 = vst.msk [vmem:[#allocation2 + $0x8] sm:$0xff] %vm34_vm0, %v212_v29 }
 0x1bd   :  { %215 = vst.msk [vmem:[#allocation2] sm:$0xff] %vm34_vm0, %v207_v31 }
 0x1be   :  { %323 = shalt.err (!%p320_p4)
}
 0x1bf   :  { %s324_s25 = scalar_lea.hbm %s438_s5, 256 }
 0x1c0   :  { %p325_p5 = scmp.ne.s32.totalorder %s438_s5, %s324_s25  ;;  %p328_p6 = scmp.lt.u32.totalorder %s324_s25, %s438_s5 }
 0x1c2   :  { %p330_p7 = pnand %p328_p6, %p325_p5 }
 0x1c4   :  { %333 = shalt.err (!%p330_p7)
}
 0x1c5   :  { %s337_s30 = smov 128   ;;  %s338_s6 = smov 8  }
 0x1c6   :  { %228 = dma.vmem_to_hbm [thread:$0]  %s223_s23, 256, %s438_s5, [#allocation3], %s337_s30, %s337_s30, %s338_s6  }
 0x1c7   :  { %334 = dma.done.wait [#allocation3], 256  }
 0x1c8   :  { %335 = vsyncadd [#allocation3], 4294967040 }
 0x1c9   :  { %232 = vsyncpa [#allocation3], 1 }

</bundles_post_ra>
